<compile_context>
chip_gen: v5e
topology: v5e:2x2
jax: 0.10.0
libtpu: 0.0.40
codegen_flags: <defaults>
</compile_context>

<pallas_src>
import jax
import jax.numpy as jnp
from jax.experimental import pallas as pl
from jax.experimental.pallas import tpu as pltpu

_HIDDEN = 128


def _mlp_kernel(x_ref, w1_ref, b1_ref, w2_ref, b2_ref, o_ref):
    # x_ref: (TM, obs_n) f32; w1_ref: (obs_n, H) f32; b1_ref: (1, H) f32
    # w2_ref: (H, act_n) bf16; b2_ref: (1, act_n) f32; o_ref: (TM, act_n) f32
    x = x_ref[...]
    w1 = w1_ref[...]
    tm = x.shape[0]
    obs_n = x.shape[1]
    hidden = w1.shape[1]

    # ---- Layer 1 on the VPU ------------------------------------------------
    # K = obs_n is tiny (4 for CartPole): an MXU pass would be nearly empty and
    # pay full push/pop latency, so use obs_n unrolled broadcast-mul + add VPU
    # ops.  Per-feature broadcasts are fine at obs_n=4; fall back to the MXU if
    # obs_n grows (>~16).
    h = jnp.broadcast_to(b1_ref[...], (tm, hidden))
    for k in range(obs_n):  # static python loop -> fully unrolled at trace time
        h = h + x[:, k:k + 1] * w1[k:k + 1, :]
    h = jnp.maximum(h, 0.0)  # ReLU

    # ---- Layer 2 on the MXU: bf16 operands, f32 accumulate, f32 bias add ----
    y = jnp.dot(h.astype(jnp.bfloat16), w2_ref[...],
                preferred_element_type=jnp.float32)
    o_ref[...] = (y + b2_ref[...]).astype(o_ref.dtype)


def _choose_tile_m(B, target=512):
    """Rows per grid step: whole batch when small, ~target rows when large,
    and >= 2 (roughly even, multiple-of-8) steps for medium batches so the
    'parallel' batch axis can be sharded across both TensorCores on v7x."""
    if B <= 256:
        return B                               # single full-batch tile
    if B <= 2 * target:
        return ((-(-B // 2)) + 7) // 8 * 8     # two even-ish tiles
    return target                              # grid >= 2 guaranteed


def prepare_params(w1, b1, w2, b2):
    """One-time parameter prep (hoisted out of the per-forward path):
    bf16 layer-2 weight for the MXU, biases as (1, n) rows, f32 elsewhere."""
    return (jnp.asarray(w1, jnp.float32),
            jnp.asarray(b1, jnp.float32).reshape(1, -1),
            jnp.asarray(w2, jnp.bfloat16),
            jnp.asarray(b2, jnp.float32).reshape(1, -1))


def policy_gradient_net_forward(x, w1, b1, w2, b2, *, tile_m=None):
    """x: (B, obs_n) f32; w1: (obs_n, 128) f32; b1: (1, 128) f32;
    w2: (128, act_n) bf16 (from prepare_params); b2: (1, act_n) f32.
    Returns (B, act_n) f32 logits."""
    B, obs_n = x.shape
    hidden = w1.shape[1]
    act_n = w2.shape[1]
    if w2.dtype != jnp.bfloat16:               # no-op if params were prepared
        w2 = w2.astype(jnp.bfloat16)
    if tile_m is None:
        tile_m = _choose_tile_m(B)
    tile_m = min(tile_m, B)

    # Partial last tile is handled by Pallas boundary-block masking -> no
    # wrapper-side pad/slice HLOs around the kernel.
    grid = (pl.cdiv(B, tile_m),)

    return pl.pallas_call(
        _mlp_kernel,
        out_shape=jax.ShapeDtypeStruct((B, act_n), jnp.float32),
        grid=grid,
        in_specs=[
            # Batch tile marches with the grid.
            pl.BlockSpec((tile_m, obs_n), lambda i: (i, 0)),
            # Weights/biases: constant index_map -> DMA'd once and kept
            # resident in VMEM for the whole call (~66 KB total).
            pl.BlockSpec((obs_n, hidden), lambda i: (0, 0)),
            pl.BlockSpec((1, hidden), lambda i: (0, 0)),
            pl.BlockSpec((hidden, act_n), lambda i: (0, 0)),
            pl.BlockSpec((1, act_n), lambda i: (0, 0)),
        ],
        # Output written directly at (tile_m, act_n): act_n equals the full
        # last dim, so no lane padding and no wrapper-side slice.
        out_specs=pl.BlockSpec((tile_m, act_n), lambda i: (i, 0)),
        compiler_params=pltpu.CompilerParams(
            # Batch tiles are independent -> shard across TensorCores (v7x).
            dimension_semantics=("parallel",),
            vmem_limit_bytes=32 << 20,
        ),
    )(x, w1, b1, w2, b2)


def init_params(key, obs_n, act_n, hidden=_HIDDEN):
    """Deterministic PyTorch-style Linear init: U(-1/sqrt(fan_in), 1/sqrt(fan_in))."""
    k1, k2, k3, k4 = jax.random.split(key, 4)
    bound1 = 1.0 / jnp.sqrt(obs_n)
    bound2 = 1.0 / jnp.sqrt(hidden)
    w1 = jax.random.uniform(k1, (obs_n, hidden), jnp.float32, -bound1, bound1)
    b1 = jax.random.uniform(k2, (1, hidden), jnp.float32, -bound1, bound1)
    w2 = jax.random.uniform(k3, (hidden, act_n), jnp.float32, -bound2, bound2)
    b2 = jax.random.uniform(k4, (1, act_n), jnp.float32, -bound2, bound2)
    return w1, b1, w2, b2


if __name__ == "__main__":
    # CartPole-v1: obs_n = 4, act_n = 2.  Batch a rollout's worth of states per
    # call; B deliberately NOT a multiple of 8/128 tiles.
    B, obs_n, act_n = 200, 4, 2
    key = jax.random.PRNGKey(0)
    k_x, k_p, k_x2 = jax.random.split(key, 3)
    x = jax.random.normal(k_x, (B, obs_n), jnp.float32)
    w1, b1, w2, b2 = init_params(k_p, obs_n, act_n)
    params = prepare_params(w1, b1, w2, b2)   # one-time bf16 cast, hoisted

    # Pure-JAX f32 reference with the same semantics as the PyTorch module.
    def ref_fn(xx):
        return jnp.maximum(xx @ w1 + b1, 0.0) @ w2 + b2

    # 1) default tiling (single full-batch tile at B=200).
    out = jax.block_until_ready(policy_gradient_net_forward(x, *params))
    assert out.shape == (B, act_n)
    assert jnp.allclose(out, ref_fn(x), atol=3e-2, rtol=3e-2), "default-tile mismatch"

    # 2) forced small tile -> multi-step grid with a partial last tile
    #    (exercises Pallas boundary-block masking: 200 = 3*64 + 8).
    out2 = jax.block_until_ready(policy_gradient_net_forward(x, *params, tile_m=64))
    assert jnp.allclose(out2, ref_fn(x), atol=3e-2, rtol=3e-2), "partial-tile mismatch"

    # 3) bigger batch -> _choose_tile_m picks >= 2 even tiles (both v7x TCs).
    B2 = 1000
    x2 = jax.random.normal(k_x2, (B2, obs_n), jnp.float32)
    out3 = jax.block_until_ready(policy_gradient_net_forward(x2, *params))
    assert out3.shape == (B2, act_n)
    assert jnp.allclose(out3, ref_fn(x2), atol=3e-2, rtol=3e-2), "large-batch mismatch"

    print("KERNEL_OK")
</pallas_src>

<mosaic_0001>
module attributes {stable_mosaic.version = 11 : i64} {
  func.func @_mlp_kernel(%arg0: i32, %arg1: memref<200x4xf32, #tpu.memory_space<vmem>>, %arg2: memref<4x128xf32, #tpu.memory_space<vmem>>, %arg3: memref<1x128xf32, #tpu.memory_space<vmem>>, %arg4: memref<128x2xbf16, #tpu.memory_space<vmem>>, %arg5: memref<1x2xf32, #tpu.memory_space<vmem>>, %arg6: memref<200x2xf32, #tpu.memory_space<vmem>>) attributes {dimension_semantics = [#tpu.dimension_semantics<parallel>], iteration_bounds = array<i64: 1>, scalar_prefetch = 0 : i64, scratch_operands = 0 : i64, tpu.core_type = #tpu.core_type<tc>, window_params = [{transform_indices = @transform_0, window_bounds = array<i64: 200, 4>}, {pipeline_mode = #tpu.pipeline_mode<synchronous>, transform_indices = @transform_1, window_bounds = array<i64: 4, 128>}, {pipeline_mode = #tpu.pipeline_mode<synchronous>, transform_indices = @transform_2, window_bounds = array<i64: 1, 128>}, {pipeline_mode = #tpu.pipeline_mode<synchronous>, transform_indices = @transform_3, window_bounds = array<i64: 128, 2>}, {pipeline_mode = #tpu.pipeline_mode<synchronous>, transform_indices = @transform_4, window_bounds = array<i64: 1, 2>}, {transform_indices = @transform_5, window_bounds = array<i64: 200, 2>}]} {
    %c0 = arith.constant 0 : index
    %c0_0 = arith.constant 0 : index
    %0 = vector.load %arg1[%c0, %c0_0] : memref<200x4xf32, #tpu.memory_space<vmem>>, vector<200x4xf32>
    %c0_1 = arith.constant 0 : index
    %c0_2 = arith.constant 0 : index
    %1 = vector.load %arg2[%c0_1, %c0_2] : memref<4x128xf32, #tpu.memory_space<vmem>>, vector<4x128xf32>
    %c0_3 = arith.constant 0 : index
    %c0_4 = arith.constant 0 : index
    %2 = vector.load %arg3[%c0_3, %c0_4] : memref<1x128xf32, #tpu.memory_space<vmem>>, vector<1x128xf32>
    %3 = vector.shape_cast %2 : vector<1x128xf32> to vector<1x128xf32>
    %4 = vector.broadcast %3 : vector<1x128xf32> to vector<200x128xf32>
    %5 = vector.extract_strided_slice %0 {offsets = [0, 0], sizes = [200, 1], strides = [1, 1]} : vector<200x4xf32> to vector<200x1xf32>
    %6 = vector.extract_strided_slice %1 {offsets = [0, 0], sizes = [1, 128], strides = [1, 1]} : vector<4x128xf32> to vector<1x128xf32>
    %7 = vector.broadcast %5 : vector<200x1xf32> to vector<200x128xf32>
    %8 = vector.broadcast %6 : vector<1x128xf32> to vector<200x128xf32>
    %9 = arith.mulf %7, %8 : vector<200x128xf32>
    %10 = arith.addf %4, %9 : vector<200x128xf32>
    %11 = vector.extract_strided_slice %0 {offsets = [0, 1], sizes = [200, 1], strides = [1, 1]} : vector<200x4xf32> to vector<200x1xf32>
    %12 = vector.extract_strided_slice %1 {offsets = [1, 0], sizes = [1, 128], strides = [1, 1]} : vector<4x128xf32> to vector<1x128xf32>
    %13 = vector.broadcast %11 : vector<200x1xf32> to vector<200x128xf32>
    %14 = vector.broadcast %12 : vector<1x128xf32> to vector<200x128xf32>
    %15 = arith.mulf %13, %14 : vector<200x128xf32>
    %16 = arith.addf %10, %15 : vector<200x128xf32>
    %17 = vector.extract_strided_slice %0 {offsets = [0, 2], sizes = [200, 1], strides = [1, 1]} : vector<200x4xf32> to vector<200x1xf32>
    %18 = vector.extract_strided_slice %1 {offsets = [2, 0], sizes = [1, 128], strides = [1, 1]} : vector<4x128xf32> to vector<1x128xf32>
    %19 = vector.broadcast %17 : vector<200x1xf32> to vector<200x128xf32>
    %20 = vector.broadcast %18 : vector<1x128xf32> to vector<200x128xf32>
    %21 = arith.mulf %19, %20 : vector<200x128xf32>
    %22 = arith.addf %16, %21 : vector<200x128xf32>
    %23 = vector.extract_strided_slice %0 {offsets = [0, 3], sizes = [200, 1], strides = [1, 1]} : vector<200x4xf32> to vector<200x1xf32>
    %24 = vector.extract_strided_slice %1 {offsets = [3, 0], sizes = [1, 128], strides = [1, 1]} : vector<4x128xf32> to vector<1x128xf32>
    %25 = vector.broadcast %23 : vector<200x1xf32> to vector<200x128xf32>
    %26 = vector.broadcast %24 : vector<1x128xf32> to vector<200x128xf32>
    %27 = arith.mulf %25, %26 : vector<200x128xf32>
    %28 = arith.addf %22, %27 : vector<200x128xf32>
    %cst = arith.constant 0.000000e+00 : f32
    %29 = vector.broadcast %cst : f32 to vector<200x128xf32>
    %30 = arith.maximumf %28, %29 : vector<200x128xf32>
    %31 = arith.truncf %30 : vector<200x128xf32> to vector<200x128xbf16>
    %c0_5 = arith.constant 0 : index
    %c0_6 = arith.constant 0 : index
    %32 = vector.load %arg4[%c0_5, %c0_6] : memref<128x2xbf16, #tpu.memory_space<vmem>>, vector<128x2xbf16>
    %cst_7 = arith.constant dense<0.000000e+00> : vector<200x2xf32>
    %33 = tpu.matmul %31, %32, %cst_7 {dimension_numbers = #tpu.dot_dimension_numbers<[1], [0], [0], [1], [0, 0, 1, 1], [], []>} : vector<200x128xbf16>, vector<128x2xbf16>, vector<200x2xf32> -> vector<200x2xf32>
    %c0_8 = arith.constant 0 : index
    %c0_9 = arith.constant 0 : index
    %34 = vector.load %arg5[%c0_8, %c0_9] : memref<1x2xf32, #tpu.memory_space<vmem>>, vector<1x2xf32>
    %35 = vector.broadcast %34 : vector<1x2xf32> to vector<200x2xf32>
    %36 = arith.addf %33, %35 : vector<200x2xf32>
    %c0_10 = arith.constant 0 : index
    %c0_11 = arith.constant 0 : index
    %37 = vector.load %arg6[%c0_10, %c0_11] : memref<200x2xf32, #tpu.memory_space<vmem>>, vector<200x2xf32>
    tpu.vector_store %arg6[%c0_10, %c0_11], %36 {strides = array<i32>} : memref<200x2xf32, #tpu.memory_space<vmem>>, vector<200x2xf32>,
    return
  }
  func.func @transform_0(%arg0: i32) -> (i32, i32) {
    %c0_i32 = arith.constant 0 : i32
    %c0_i32_0 = arith.constant 0 : i32
    return %arg0, %c0_i32 : i32, i32
  }
  func.func @transform_1(%arg0: i32) -> (i32, i32) {
    %c0_i32 = arith.constant 0 : i32
    %c0_i32_0 = arith.constant 0 : i32
    %c0_i32_1 = arith.constant 0 : i32
    return %c0_i32, %c0_i32_0 : i32, i32
  }
  func.func @transform_2(%arg0: i32) -> (i32, i32) {
    %c0_i32 = arith.constant 0 : i32
    %c0_i32_0 = arith.constant 0 : i32
    %c0_i32_1 = arith.constant 0 : i32
    return %c0_i32, %c0_i32_0 : i32, i32
  }
  func.func @transform_3(%arg0: i32) -> (i32, i32) {
    %c0_i32 = arith.constant 0 : i32
    %c0_i32_0 = arith.constant 0 : i32
    %c0_i32_1 = arith.constant 0 : i32
    return %c0_i32, %c0_i32_0 : i32, i32
  }
  func.func @transform_4(%arg0: i32) -> (i32, i32) {
    %c0_i32 = arith.constant 0 : i32
    %c0_i32_0 = arith.constant 0 : i32
    %c0_i32_1 = arith.constant 0 : i32
    return %c0_i32, %c0_i32_0 : i32, i32
  }
  func.func @transform_5(%arg0: i32) -> (i32, i32) {
    %c0_i32 = arith.constant 0 : i32
    %c0_i32_0 = arith.constant 0 : i32
    return %arg0, %c0_i32 : i32, i32
  }
}

</mosaic_0001>

<bundles_post_ra>
// kernel: tpu_custom_call.1
= control target key start
LH: loop header
LB: loop body
LE: loop exit
PB: predicated region body
PF: predicated region fallthrough
CT: control target
= control target key end

     0   :  { %v985_v0 = vmov 0   ;;  %v986_v26 = vmov 1   ;;  %v987_v37 = vmov 3   ;;  %v988_v40 = vmov 2   ;;  %s1740_s0 = inlined_call_operand.vmem [shape: f32[200,4], index: 0, kind: input, shape index: {}]   ;;  %s1741_s2 = inlined_call_operand.vmem [shape: f32[1,128], index: 2, kind: input, shape index: {}]   ;;  %s1742_s1 = inlined_call_operand.vmem [shape: f32[4,128], index: 1, kind: input, shape index: {}]   ;;  %s1743_s3 = inlined_call_operand.vmem [shape: bf16[128,2], index: 3, kind: input, shape index: {}]   ;;  %s1744_s4 = inlined_call_operand.vmem [shape: f32[1,2], index: 4, kind: input, shape index: {}]   ;;  %s1745_s5 = inlined_call_operand.vmem [shape: f32[200,2], index: 5, kind: output, shape index: {}]  }
   0x1   :  { %958 = vset.pattern.permute.xlu2 %v985_v0  ;;  %957 = vset.pattern.permute.xlu1 %v985_v0  ;;  %v1022_v1 = vld [vmem:[%s1740_s0 + $0x20] sm:$0xff]  ;;  %v1027_v2 = vld [vmem:[%s1740_s0 + $0x10] sm:$0xff]  ;;  %v1040_v4 = vld [vmem:[%s1740_s0 + $0x28] sm:$0xff]  ;;  %vm858_vm0 = vcmask 15360  }
   0x2   :  { %v1032_v3 = vld [vmem:[%s1740_s0] sm:$0xff]  ;;  %956 = vset.pattern.permute.xlu0 %v985_v0  ;;  %72 = vperm.xlu2 %958, %v1022_v1   ;;  %v1045_v5 = vld [vmem:[%s1740_s0 + $0x18] sm:$0xff]  ;;  %v1050_v6 = vld [vmem:[%s1740_s0 + $0x8] sm:$0xff] }
   0x3   :  { %62 = vperm.xlu1 %957, %v1027_v2   ;;  %52 = vperm.xlu0 %956, %v1032_v3   ;;  %v1058_v7 = vld [vmem:[%s1740_s0 + $0x40] sm:$0xff]  ;;  %v1063_v8 = vld [vmem:[%s1740_s0 + $0x38] sm:$0xff]  ;;  %v1068_v9 = vld [vmem:[%s1740_s0 + $0x30] sm:$0xff] }
   0x4   :  { %v1076_v10 = vld [vmem:[%s1740_s0 + $0x58] sm:$0xff]  ;;  %v1081_v11 = vld [vmem:[%s1740_s0 + $0x50] sm:$0xff]  ;;  %v1086_v12 = vld [vmem:[%s1740_s0 + $0x48] sm:$0xff] }
   0x5   :  { %v1094_v13 = vld [vmem:[%s1740_s0 + $0x70] sm:$0xff]  ;;  %v1099_v14 = vld [vmem:[%s1740_s0 + $0x68] sm:$0xff]  ;;  %v1104_v15 = vld [vmem:[%s1740_s0 + $0x60] sm:$0xff] }
   0x6   :  { %v1112_v16 = vld [vmem:[%s1740_s0 + $0x88] sm:$0xff]  ;;  %v1117_v17 = vld [vmem:[%s1740_s0 + $0x80] sm:$0xff]  ;;  %v1122_v18 = vld [vmem:[%s1740_s0 + $0x78] sm:$0xff] }
   0x7   :  { %v1130_v19 = vld [vmem:[%s1740_s0 + $0xa0] sm:$0xff]  ;;  %v1135_v20 = vld [vmem:[%s1740_s0 + $0x98] sm:$0xff]  ;;  %v1140_v21 = vld [vmem:[%s1740_s0 + $0x90] sm:$0xff] }
   0x8   :  { %v1148_v22 = vld [vmem:[%s1740_s0 + $0xb8] sm:$0xff]  ;;  %v1153_v23 = vld [vmem:[%s1740_s0 + $0xb0] sm:$0xff]  ;;  %v1158_v24 = vld [vmem:[%s1740_s0 + $0xa8] sm:$0xff] }
   0x9   :  { %v1166_v25 = vld [vmem:[%s1740_s0 + $0xc0] sm:$0xff] }
   0xa   :  { %77 = vperm.xlu2 %958, %v1040_v4   ;;  %v1227_v44 = vld [vmem:[%s1742_s1] sm:$0xf] }
   0xb   :  { %67 = vperm.xlu1 %957, %v1045_v5   ;;  %57 = vperm.xlu0 %956, %v1050_v6   ;;  %v1236_v48 = vperm.slane %v1227_v44, 0  ;;  %v1243_v50 = vld [vmem:[%s1741_s2] ss:$0 sm:$0xff]  ;;  %v1251_v53 = vperm.slane %v1227_v44, 1 }
  0x12   :  { %92 = vperm.xlu2 %958, %v1058_v7  }
  0x13   :  { %87 = vperm.xlu1 %957, %v1063_v8   ;;  %82 = vperm.xlu0 %956, %v1068_v9  }
  0x1a   :  { %107 = vperm.xlu2 %958, %v1076_v10  }
  0x1b   :  { %102 = vperm.xlu1 %957, %v1081_v11   ;;  %97 = vperm.xlu0 %956, %v1086_v12  }
  0x22   :  { %122 = vperm.xlu2 %958, %v1094_v13  }
  0x23   :  { %117 = vperm.xlu1 %957, %v1099_v14   ;;  %112 = vperm.xlu0 %956, %v1104_v15  }
  0x2a   :  { %137 = vperm.xlu2 %958, %v1112_v16  }
  0x2b   :  { %132 = vperm.xlu1 %957, %v1117_v17   ;;  %127 = vperm.xlu0 %956, %v1122_v18  }
  0x32   :  { %152 = vperm.xlu2 %958, %v1130_v19  }
  0x33   :  { %147 = vperm.xlu1 %957, %v1135_v20   ;;  %142 = vperm.xlu0 %956, %v1140_v21  }
  0x3a   :  { %167 = vperm.xlu2 %958, %v1148_v22  }
  0x3b   :  { %162 = vperm.xlu1 %957, %v1153_v23   ;;  %157 = vperm.xlu0 %956, %v1158_v24  }
  0x42   :  { %960 = vset.pattern.permute.xlu2 %v986_v26 }
  0x43   :  { %959 = vset.pattern.permute.xlu1 %v986_v26  ;;  %172 = vperm.xlu0 %956, %v1166_v25  }
  0x44   :  { %231 = vperm.xlu2 %960, %v1050_v6   ;;  %227 = vperm.xlu1 %959, %v1032_v3  }
  0x4b   :  { %961 = vset.pattern.permute.xlu0 %v986_v26 }
  0x4c   :  { %243 = vperm.xlu2 %960, %v1022_v1   ;;  %239 = vperm.xlu1 %959, %v1045_v5  }
  0x4d   :  { %235 = vperm.xlu0 %961, %v1027_v2  }
  0x54   :  { %251 = vperm.xlu2 %960, %v1068_v9   ;;  %247 = vperm.xlu1 %959, %v1040_v4  }
  0x55   :  { %255 = vperm.xlu0 %961, %v1063_v8  }
  0x5c   :  { %263 = vperm.xlu2 %960, %v1086_v12   ;;  %259 = vperm.xlu1 %959, %v1058_v7   ;;  %v73_v27 = vpop.permute.xlu2 %72 }
  0x5d   :  { %267 = vperm.xlu0 %961, %v1081_v11   ;;  %v180_v58 = vmul.f32 %v1236_v48, %v73_v27 }
  0x5f   :  { %v205_v62 = vadd.f32 %v1243_v50, %v180_v58 }
  0x64   :  { %275 = vperm.xlu2 %960, %v1104_v15   ;;  %271 = vperm.xlu1 %959, %v1076_v10   ;;  %v1182_v28 = vpop.permute.xlu2 %77 }
  0x65   :  { %279 = vperm.xlu0 %961, %v1099_v14  }
  0x6c   :  { %287 = vperm.xlu2 %960, %v1122_v18   ;;  %283 = vperm.xlu1 %959, %v1094_v13   ;;  %v1187_v29 = vpop.permute.xlu2 %92 }
  0x6d   :  { %291 = vperm.xlu0 %961, %v1117_v17  }
  0x74   :  { %299 = vperm.xlu2 %960, %v1140_v21   ;;  %295 = vperm.xlu1 %959, %v1112_v16   ;;  %v1192_v30 = vpop.permute.xlu2 %107 }
  0x75   :  { %303 = vperm.xlu0 %961, %v1135_v20   ;;  %v1195_v31 = vpop.permute.xlu1 %62  ;;  %v1197_v32 = vpop.permute.xlu0 %52 }
  0x7c   :  { %311 = vperm.xlu2 %960, %v1158_v24   ;;  %307 = vperm.xlu1 %959, %v1130_v19   ;;  %v1201_v33 = vpop.permute.xlu2 %122 }
  0x7d   :  { %315 = vperm.xlu0 %961, %v1153_v23   ;;  %v1204_v34 = vpop.permute.xlu1 %67  ;;  %v58_v35 = vpop.permute.xlu0 %57 }
  0x7e   :  { %v177_v49 = vmul.f32 %v1236_v48, %v58_v35 }
  0x80   :  { %v202_v51 = vadd.f32 %v1243_v50, %v177_v49 }
  0x84   :  { %323 = vperm.xlu2 %960, %v1166_v25   ;;  %319 = vperm.xlu1 %959, %v1148_v22   ;;  %v1208_v36 = vpop.permute.xlu2 %137 }
  0x85   :  { %965 = vset.pattern.permute.xlu0 %v987_v37  ;;  %v1211_v38 = vpop.permute.xlu1 %87  ;;  %v83_v39 = vpop.permute.xlu0 %82 }
  0x86   :  { %581 = vperm.xlu0 %965, %v1099_v14   ;;  %v182_v0 = vmul.f32 %v1236_v48, %v83_v39  ;;  %v176_v39 = vmul.f32 %v1236_v48, %v1197_v32 }
  0x88   :  { %v207_v27 = vadd.f32 %v1243_v50, %v182_v0 }
  0x8c   :  { %963 = vset.pattern.permute.xlu2 %v988_v40  ;;  %962 = vset.pattern.permute.xlu1 %v988_v40  ;;  %v1216_v41 = vpop.permute.xlu2 %152 }
  0x8d   :  { %v1218_v42 = vpop.permute.xlu1 %102  ;;  %386 = vperm.xlu2 %963, %v1027_v2   ;;  %382 = vperm.xlu1 %962, %v1050_v6   ;;  %v98_v43 = vpop.permute.xlu0 %97 }
  0x8e   :  { %966 = vset.pattern.permute.xlu0 %v988_v40 }
  0x8f   :  { %378 = vperm.xlu0 %966, %v1032_v3  }
  0x94   :  { %v1229_v45 = vpop.permute.xlu2 %167 }
  0x95   :  { %v1231_v46 = vpop.permute.xlu1 %117  ;;  %394 = vperm.xlu2 %963, %v1022_v1   ;;  %390 = vperm.xlu1 %962, %v1045_v5   ;;  %v113_v47 = vpop.permute.xlu0 %112 }
  0x97   :  { %398 = vperm.xlu0 %966, %v1040_v4  }
  0x9d   :  { %v1246_v52 = vpop.permute.xlu1 %132  ;;  %406 = vperm.xlu2 %963, %v1063_v8   ;;  %402 = vperm.xlu1 %962, %v1068_v9   ;;  %v1253_v54 = vpop.permute.xlu0 %127 }
  0x9e   :  { %v232_v55 = vpop.permute.xlu2 %231 }
  0x9f   :  { %v328_v56 = vmul.f32 %v1251_v53, %v232_v55  ;;  %410 = vperm.xlu0 %966, %v1058_v7  }
  0xa1   :  { %v1257_v57 = vadd.f32 %v328_v56, %v202_v51  ;;  %v185_v56 = vmul.f32 %v1236_v48, %v98_v43 }
  0xa5   :  { %v1260_v59 = vpop.permute.xlu1 %147  ;;  %418 = vperm.xlu2 %963, %v1081_v11   ;;  %414 = vperm.xlu1 %962, %v1086_v12   ;;  %v1264_v60 = vpop.permute.xlu0 %142 }
  0xa6   :  { %v244_v61 = vpop.permute.xlu2 %243 }
  0xa7   :  { %v331_v63 = vmul.f32 %v1251_v53, %v244_v61  ;;  %426 = vperm.xlu0 %966, %v1104_v15   ;;  %v201_v61 = vadd.f32 %v1243_v50, %v176_v39  ;;  %v178_v39 = vmul.f32 %v1236_v48, %v1195_v31 }
  0xa9   :  { %v1270_v26 = vadd.f32 %v331_v63, %v205_v62  ;;  %v203_v31 = vadd.f32 %v1243_v50, %v178_v39  ;;  %v183_v39 = vmul.f32 %v1236_v48, %v1211_v38 }
  0xad   :  { %v1273_v35 = vpop.permute.xlu1 %162  ;;  %964 = vset.pattern.permute.xlu2 %v987_v37  ;;  %430 = vperm.xlu1 %962, %v1099_v14   ;;  %v1277_v49 = vpop.permute.xlu0 %157  ;;  %v210_v14 = vadd.f32 %v1243_v50, %v185_v56 }
  0xae   :  { %577 = vperm.xlu2 %964, %v1104_v15   ;;  %v252_v51 = vpop.permute.xlu2 %251 }
  0xaf   :  { %v333_v55 = vmul.f32 %v1251_v53, %v252_v51  ;;  %458 = vperm.xlu0 %966, %v1130_v19   ;;  %v179_v51 = vmul.f32 %v1236_v48, %v1204_v34 }
  0xb1   :  { %v1285_v58 = vadd.f32 %v333_v55, %v207_v27  ;;  %v188_v55 = vmul.f32 %v1236_v48, %v113_v47  ;;  %v204_v56 = vadd.f32 %v1243_v50, %v179_v51 }
  0xb5   :  { %434 = vperm.xlu1 %962, %v1094_v13   ;;  %v1290_v62 = vpop.permute.xlu0 %172 }
  0xb6   :  { %967 = vset.pattern.permute.xlu2 %v988_v40  ;;  %v264_v15 = vpop.permute.xlu2 %263  ;;  %v228_v63 = vpop.permute.xlu1 %227 }
  0xb7   :  { %v336_v0 = vmul.f32 %v1251_v53, %v264_v15  ;;  %v327_v32 = vmul.f32 %v1251_v53, %v228_v63  ;;  %470 = vperm.xlu0 %966, %v1148_v22   ;;  %438 = vperm.xlu2 %967, %v1122_v18  }
  0xb9   :  { %v1297_v43 = vadd.f32 %v336_v0, %v210_v14  ;;  %v1299_v27 = vadd.f32 %v327_v32, %v201_v61  ;;  %v213_v14 = vadd.f32 %v1243_v50, %v188_v55  ;;  %v181_v55 = vmul.f32 %v1236_v48, %v1182_v28 }
  0xba   :  { %v208_v28 = vadd.f32 %v1243_v50, %v183_v39 }
  0xbd   :  { %968 = vset.pattern.permute.xlu1 %v987_v37 }
  0xbe   :  { %v276_v15 = vpop.permute.xlu2 %275  ;;  %585 = vperm.xlu1 %968, %v1094_v13   ;;  %v240_v63 = vpop.permute.xlu1 %239 }
  0xbf   :  { %v339_v61 = vmul.f32 %v1251_v53, %v276_v15  ;;  %v330_v0 = vmul.f32 %v1251_v53, %v240_v63  ;;  %975 = vset.pattern.permute.xlu0 %v987_v37  ;;  %v236_v34 = vpop.permute.xlu0 %235  ;;  %969 = vset.pattern.permute.xlu2 %v987_v37  ;;  %v191_v15 = vmul.f32 %v1236_v48, %v1253_v54 }
  0xc0   :  { %v329_v47 = vmul.f32 %v1251_v53, %v236_v34  ;;  %533 = vperm.xlu0 %975, %v1050_v6   ;;  %589 = vperm.xlu2 %969, %v1122_v18   ;;  %v206_v18 = vadd.f32 %v1243_v50, %v181_v55  ;;  %v194_v55 = vmul.f32 %v1236_v48, %v1264_v60 }
  0xc1   :  { %v1318_v13 = vadd.f32 %v339_v61, %v213_v14  ;;  %v1320_v32 = vadd.f32 %v330_v0, %v204_v56  ;;  %v216_v56 = vadd.f32 %v1243_v50, %v191_v15  ;;  %v186_v15 = vmul.f32 %v1236_v48, %v1218_v42 }
  0xc2   :  { %v1322_v51 = vadd.f32 %v329_v47, %v203_v31  ;;  %v184_v47 = vmul.f32 %v1236_v48, %v1187_v29 }
  0xc3   :  { %v211_v29 = vadd.f32 %v1243_v50, %v186_v15 }
  0xc6   :  { %v288_v63 = vpop.permute.xlu2 %287  ;;  %970 = vset.pattern.permute.xlu1 %v988_v40  ;;  %v248_v6 = vpop.permute.xlu1 %247 }
  0xc7   :  { %v342_v14 = vmul.f32 %v1251_v53, %v288_v63  ;;  %v332_v61 = vmul.f32 %v1251_v53, %v248_v6  ;;  %v256_v0 = vpop.permute.xlu0 %255  ;;  %462 = vperm.xlu1 %970, %v1158_v24   ;;  %v209_v6 = vadd.f32 %v1243_v50, %v184_v47  ;;  %v189_v47 = vmul.f32 %v1236_v48, %v1231_v46 }
  0xc8   :  { %v334_v54 = vmul.f32 %v1251_v53, %v256_v0  ;;  %593 = vperm.xlu0 %975, %v1117_v17   ;;  %609 = vperm.xlu2 %969, %v1130_v19   ;;  %v219_v19 = vadd.f32 %v1243_v50, %v194_v55 }
  0xc9   :  { %v1340_v38 = vadd.f32 %v342_v14, %v216_v56  ;;  %v1342_v34 = vadd.f32 %v332_v61, %v206_v18 }
  0xca   :  { %v1344_v31 = vadd.f32 %v334_v54, %v208_v28  ;;  %v187_v28 = vmul.f32 %v1236_v48, %v1192_v30  ;;  %v197_v54 = vmul.f32 %v1236_v48, %v1277_v49 }
  0xcc   :  { %v222_v15 = vadd.f32 %v1243_v50, %v197_v54 }
  0xce   :  { %v300_v39 = vpop.permute.xlu2 %299  ;;  %v260_v63 = vpop.permute.xlu1 %259 }
  0xcf   :  { %v345_v18 = vmul.f32 %v1251_v53, %v300_v39  ;;  %v335_v56 = vmul.f32 %v1251_v53, %v260_v63  ;;  %v268_v14 = vpop.permute.xlu0 %267  ;;  %971 = vset.pattern.permute.xlu1 %v987_v37 }
  0xd0   :  { %v337_v60 = vmul.f32 %v1251_v53, %v268_v14  ;;  %561 = vperm.xlu0 %975, %v1058_v7   ;;  %529 = vperm.xlu2 %969, %v1032_v3   ;;  %v212_v3 = vadd.f32 %v1243_v50, %v187_v28  ;;  %v192_v14 = vmul.f32 %v1236_v48, %v1246_v52 }
  0xd1   :  { %v1361_v42 = vadd.f32 %v345_v18, %v219_v19  ;;  %v1363_v61 = vadd.f32 %v335_v56, %v209_v6  ;;  %613 = vperm.xlu1 %971, %v1158_v24   ;;  %v214_v6 = vadd.f32 %v1243_v50, %v189_v47  ;;  %v190_v18 = vmul.f32 %v1236_v48, %v1201_v33 }
  0xd2   :  { %v1366_v0 = vadd.f32 %v337_v60, %v211_v29  ;;  %v200_v56 = vmul.f32 %v1236_v48, %v1290_v62 }
  0xd4   :  { %v225_v28 = vadd.f32 %v1243_v50, %v200_v56 }
  0xd6   :  { %v312_v7 = vpop.permute.xlu2 %311  ;;  %v272_v55 = vpop.permute.xlu1 %271 }
  0xd7   :  { %v348_v39 = vmul.f32 %v1251_v53, %v312_v7  ;;  %v338_v24 = vmul.f32 %v1251_v53, %v272_v55  ;;  %v280_v63 = vpop.permute.xlu0 %279  ;;  %v217_v7 = vadd.f32 %v1243_v50, %v192_v14 }
  0xd8   :  { %v340_v30 = vmul.f32 %v1251_v53, %v280_v63  ;;  %605 = vperm.xlu0 %975, %v1135_v20   ;;  %557 = vperm.xlu2 %969, %v1063_v8   ;;  %v215_v8 = vadd.f32 %v1243_v50, %v190_v18 }
  0xd9   :  { %v1382_v46 = vadd.f32 %v348_v39, %v222_v15  ;;  %v1384_v49 = vadd.f32 %v338_v24, %v212_v3  ;;  %553 = vperm.xlu1 %971, %v1068_v9   ;;  %v193_v3 = vmul.f32 %v1236_v48, %v1208_v36  ;;  %v195_v15 = vmul.f32 %v1236_v48, %v1260_v59 }
  0xda   :  { %v1387_v19 = vadd.f32 %v340_v30, %v214_v6  ;;  %v1418_v39 = vperm.slane %v1227_v44, 2 }
  0xdb   :  { %v218_v63 = vadd.f32 %v1243_v50, %v193_v3  ;;  %v220_v56 = vadd.f32 %v1243_v50, %v195_v15 }
  0xde   :  { %v324_v29 = vpop.permute.xlu2 %323  ;;  %v284_v60 = vpop.permute.xlu1 %283 }
  0xdf   :  { %v351_v54 = vmul.f32 %v1251_v53, %v324_v29  ;;  %v341_v9 = vmul.f32 %v1251_v53, %v284_v60  ;;  %v292_v47 = vpop.permute.xlu0 %291  ;;  %v927_v60 = vld [vmem:[%s1743_s3 + $0x38] sm:$0xff] }
  0xe0   :  { %v343_v33 = vmul.f32 %v1251_v53, %v292_v47  ;;  %980 = vset.pattern.permute.xlu0 %v988_v40  ;;  %973 = vset.pattern.permute.xlu2 %v988_v40 }
  0xe1   :  { %v1403_v52 = vadd.f32 %v351_v54, %v225_v28  ;;  %v1405_v62 = vadd.f32 %v341_v9, %v215_v8  ;;  %972 = vset.pattern.permute.xlu1 %v988_v40  ;;  %422 = vperm.xlu0 %980, %v1076_v10   ;;  %v196_v8 = vmul.f32 %v1236_v48, %v1216_v41 }
  0xe2   :  { %v1409_v55 = vadd.f32 %v343_v33, %v217_v7  ;;  %446 = vperm.xlu2 %973, %v1112_v16   ;;  %442 = vperm.xlu1 %972, %v1117_v17   ;;  %v198_v28 = vmul.f32 %v1236_v48, %v1273_v35 }
  0xe3   :  { %929 = vmatpush.bf16.msra.mxu2 %v927_v60  ;;  %785 = vmatpush.bf16.msra.mxu0 %v927_v60  ;;  %v221_v9 = vadd.f32 %v1243_v50, %v196_v8 }
  0xe4   :  { %930 = vmatpush.bf16.msra.mxu3 %v927_v60  ;;  %928 = vmatpush.bf16.msra.mxu1 %v927_v60 }
  0xe6   :  { %v296_v24 = vpop.permute.xlu1 %295 }
  0xe7   :  { %v344_v6 = vmul.f32 %v1251_v53, %v296_v24  ;;  %v304_v30 = vpop.permute.xlu0 %303  ;;  %v387_v18 = vpop.permute.xlu2 %386 }
  0xe8   :  { %v346_v17 = vmul.f32 %v1251_v53, %v304_v30  ;;  %v480_v14 = vmul.f32 %v1418_v39, %v387_v18 }
  0xe9   :  { %v1425_v36 = vadd.f32 %v344_v6, %v218_v63  ;;  %982 = vset.pattern.permute.xlu0 %v987_v37  ;;  %v925_v63 = vld [vmem:[%s1743_s3 + $0x28] sm:$0xff]  ;;  %v199_v6 = vmul.f32 %v1236_v48, %v1229_v45 }
  0xea   :  { %v1428_v59 = vadd.f32 %v346_v17, %v220_v56  ;;  %v1431_v29 = vadd.f32 %v480_v14, %v1322_v51  ;;  %466 = vperm.xlu2 %973, %v1153_v23   ;;  %974 = vset.pattern.permute.xlu1 %v987_v37  ;;  %v926_v51 = vld [vmem:[%s1743_s3 + $0x30] sm:$0xff] }
  0xeb   :  { %597 = vperm.xlu1 %974, %v1112_v16   ;;  %v223_v16 = vadd.f32 %v1243_v50, %v198_v28  ;;  %932 = vmatpush.bf16.msra.mxu2 %v926_v51  ;;  %v224_v18 = vadd.f32 %v1243_v50, %v199_v6  ;;  %v923_v50 = vld [vmem:[%s1743_s3 + $0x18] sm:$0xff]  ;;  %v920_v28 = vld [vmem:[%s1743_s3] sm:$0xff] }
  0xec   :  { %786 = vmatpush.bf16.msra.mxu0 %v926_v51  ;;  %933 = vmatpush.bf16.msra.mxu3 %v926_v51 }
  0xed   :  { %931 = vmatpush.bf16.msra.mxu1 %v926_v51 }
  0xee   :  { %v308_v54 = vpop.permute.xlu1 %307 }
  0xef   :  { %v347_v47 = vmul.f32 %v1251_v53, %v308_v54  ;;  %v316_v7 = vpop.permute.xlu0 %315  ;;  %v395_v41 = vpop.permute.xlu2 %394  ;;  %935 = vmatpush.bf16.msra.mxu2 %v925_v63 }
  0xf0   :  { %v349_v33 = vmul.f32 %v1251_v53, %v316_v7  ;;  %v482_v35 = vmul.f32 %v1418_v39, %v395_v41  ;;  %787 = vmatpush.bf16.msra.mxu0 %v925_v63  ;;  %936 = vmatpush.bf16.msra.mxu3 %v925_v63 }
  0xf1   :  { %v1451_v3 = vadd.f32 %v347_v47, %v221_v9  ;;  %934 = vmatpush.bf16.msra.mxu1 %v925_v63 }
  0xf2   :  { %v1453_v15 = vadd.f32 %v349_v33, %v223_v16  ;;  %v1456_v24 = vadd.f32 %v482_v35, %v1270_v26  ;;  %976 = vset.pattern.permute.xlu2 %v987_v37  ;;  %v924_v26 = vld [vmem:[%s1743_s3 + $0x20] sm:$0xff] }
  0xf3   :  { %621 = vperm.xlu2 %976, %v1148_v22   ;;  %617 = vperm.xlu1 %974, %v1153_v23  }
  0xf4   :  { %938 = vmatpush.bf16.msra.mxu2 %v924_v26  ;;  %788 = vmatpush.bf16.msra.mxu0 %v924_v26 }
  0xf5   :  { %939 = vmatpush.bf16.msra.mxu3 %v924_v26  ;;  %937 = vmatpush.bf16.msra.mxu1 %v924_v26 }
  0xf6   :  { %v320_v30 = vpop.permute.xlu1 %319 }
  0xf7   :  { %v350_v56 = vmul.f32 %v1251_v53, %v320_v30  ;;  %v407_v17 = vpop.permute.xlu2 %406  ;;  %v922_v53 = vld [vmem:[%s1743_s3 + $0x10] sm:$0xff] }
  0xf8   :  { %v485_v45 = vmul.f32 %v1418_v39, %v407_v17  ;;  %v1472_v48 = vpop.permute.xlu0 %581  ;;  %941 = vmatpush.bf16.msra.mxu2 %v923_v50  ;;  %789 = vmatpush.bf16.msra.mxu0 %v923_v50 }
  0xf9   :  { %v1474_v22 = vadd.f32 %v350_v56, %v224_v18  ;;  %942 = vmatpush.bf16.msra.mxu3 %v923_v50  ;;  %940 = vmatpush.bf16.msra.mxu1 %v923_v50 }
  0xfa   :  { %v1477_v23 = vadd.f32 %v485_v45, %v1344_v31 }
  0xfb   :  { %541 = vperm.xlu2 %976, %v1045_v5   ;;  %537 = vperm.xlu1 %974, %v1027_v2   ;;  %v921_v5 = vld [vmem:[%s1743_s3 + $0x8] sm:$0xff] }
  0xfc   :  { %944 = vmatpush.bf16.msra.mxu2 %v922_v53  ;;  %790 = vmatpush.bf16.msra.mxu0 %v922_v53 }
  0xfd   :  { %945 = vmatpush.bf16.msra.mxu3 %v922_v53  ;;  %943 = vmatpush.bf16.msra.mxu1 %v922_v53 }
  0xff   :  { %v419_v14 = vpop.permute.xlu2 %418  ;;  %v1487_v60 = vpop.permute.xlu1 %382 }
 0x100   :  { %v488_v31 = vmul.f32 %v1418_v39, %v419_v14  ;;  %947 = vmatpush.bf16.msra.mxu2 %v921_v5  ;;  %791 = vmatpush.bf16.msra.mxu0 %v921_v5 }
 0x101   :  { %v1490_v8 = vpop.permute.xlu0 %378  ;;  %948 = vmatpush.bf16.msra.mxu3 %v921_v5  ;;  %946 = vmatpush.bf16.msra.mxu1 %v921_v5 }
 0x102   :  { %v1493_v2 = vadd.f32 %v488_v31, %v1366_v0 }
 0x103   :  { %977 = vset.pattern.permute.xlu2 %v988_v40  ;;  %565 = vperm.xlu1 %974, %v1086_v12  }
 0x104   :  { %450 = vperm.xlu2 %977, %v1140_v21   ;;  %950 = vmatpush.bf16.msra.mxu2 %v920_v28 }
 0x105   :  { %792 = vmatpush.bf16.msra.mxu0 %v920_v28  ;;  %951 = vmatpush.bf16.msra.mxu3 %v920_v28 }
 0x106   :  { %949 = vmatpush.bf16.msra.mxu1 %v920_v28 }
 0x107   :  { %v391_v0 = vpop.permute.xlu1 %390 }
 0x108   :  { %v481_v51 = vmul.f32 %v1418_v39, %v391_v0  ;;  %v578_v54 = vpop.permute.xlu2 %577 }
 0x109   :  { %v399_v9 = vpop.permute.xlu0 %398 }
 0x10a   :  { %v1506_v12 = vadd.f32 %v481_v51, %v1320_v32  ;;  %v483_v47 = vmul.f32 %v1418_v39, %v399_v9 }
 0x10b   :  { %978 = vset.pattern.permute.xlu1 %v988_v40 }
 0x10c   :  { %v1511_v7 = vadd.f32 %v483_v47, %v1342_v34  ;;  %979 = vset.pattern.permute.xlu2 %v987_v37  ;;  %454 = vperm.xlu1 %978, %v1135_v20   ;;  %v1526_v20 = vperm.slane %v1227_v44, 3 }
 0x10d   :  { %601 = vperm.xlu2 %979, %v1140_v21  }
 0x10e   :  { %v642_v44 = vmul.f32 %v1526_v20, %v1472_v48 }
 0x10f   :  { %v1516_v41 = vpop.permute.xlu1 %402 }
 0x111   :  { %v411_v16 = vpop.permute.xlu0 %410  ;;  %v439_v33 = vpop.permute.xlu2 %438 }
 0x112   :  { %v486_v32 = vmul.f32 %v1418_v39, %v411_v16  ;;  %v493_v48 = vmul.f32 %v1418_v39, %v439_v33 }
 0x114   :  { %v1520_v35 = vadd.f32 %v486_v32, %v1363_v61  ;;  %474 = vperm.xlu1 %978, %v1166_v25  }
 0x115   :  { %625 = vperm.xlu2 %979, %v1166_v25   ;;  %v641_v25 = vmul.f32 %v1526_v20, %v578_v54 }
 0x117   :  { %v415_v40 = vpop.permute.xlu1 %414 }
 0x118   :  { %v487_v34 = vmul.f32 %v1418_v39, %v415_v40 }
 0x119   :  { %v427_v63 = vpop.permute.xlu0 %426 }
 0x11a   :  { %v1529_v21 = vadd.f32 %v487_v34, %v1297_v43  ;;  %v490_v6 = vmul.f32 %v1418_v39, %v427_v63  ;;  %v590_v26 = vpop.permute.xlu2 %589 }
 0x11b   :  { %v644_v31 = vmul.f32 %v1526_v20, %v590_v26 }
 0x11c   :  { %981 = vset.pattern.permute.xlu1 %v987_v37  ;;  %v515_v61 = vadd.f32 %v490_v6, %v1318_v13 }
 0x11d   :  { %549 = vperm.xlu2 %979, %v1040_v4   ;;  %545 = vperm.xlu1 %981, %v1022_v1  }
 0x11e   :  { %v666_v45 = vadd.f32 %v641_v25, %v515_v61 }
 0x11f   :  { %v431_v30 = vpop.permute.xlu1 %430 }
 0x120   :  { %v491_v43 = vmul.f32 %v1418_v39, %v431_v30  ;;  %v691_v1 = vmax.f32 %v666_v45, 0.0 }
 0x121   :  { %v459_v18 = vpop.permute.xlu0 %458 }
 0x122   :  { %v516_v56 = vadd.f32 %v491_v43, %v1387_v19  ;;  %v610_v17 = vpop.permute.xlu2 %609  ;;  %v478_v19 = vmul.f32 %v1418_v39, %v1490_v8 }
 0x124   :  { %v667_v37 = vadd.f32 %v642_v44, %v516_v56  ;;  %v503_v51 = vadd.f32 %v478_v19, %v1299_v27 }
 0x125   :  { %573 = vperm.xlu2 %979, %v1076_v10   ;;  %569 = vperm.xlu1 %981, %v1081_v11   ;;  %v479_v10 = vmul.f32 %v1418_v39, %v1487_v60  ;;  %v518_v11 = vadd.f32 %v493_v48, %v1340_v38 }
 0x126   :  { %v692_v4 = vmax.f32 %v667_v37, 0.0 }
 0x127   :  { %v435_v50 = vpop.permute.xlu1 %434  ;;  %v669_v54 = vadd.f32 %v644_v31, %v518_v11  ;;  %v504_v16 = vadd.f32 %v479_v10, %v1257_v57  ;;  %v649_v57 = vmul.f32 %v1526_v20, %v610_v17 }
 0x128   :  { %v710_v13 = vpack.c.bf16 %v692_v4, %v691_v1  ;;  %v492_v5 = vmul.f32 %v1418_v39, %v435_v50  ;;  %v484_v50 = vmul.f32 %v1418_v39, %v1516_v41 }
 0x129   :  { %v1543_v53 = vpop.permute.xlu0 %470  ;;  %v694_v60 = vmax.f32 %v669_v54, 0.0 }
 0x12a   :  { %823 = vmatmul.bf16.vlgmr.msra.gmra.mxu2 %v710_v13  ;;  %v530_v14 = vpop.permute.xlu2 %529  ;;  %v517_v9 = vadd.f32 %v492_v5, %v1405_v62  ;;  %v498_v62 = vmul.f32 %v1418_v39, %v459_v18  ;;  %v509_v19 = vadd.f32 %v484_v50, %v1285_v58 }
 0x12b   :  { %v629_v28 = vmul.f32 %v1526_v20, %v530_v14 }
 0x12c   :  { %v523_v30 = vadd.f32 %v498_v62, %v1451_v3 }
 0x12d   :  { %v654_v33 = vadd.f32 %v629_v28, %v503_v51 }
 0x12e   :  { %v674_v45 = vadd.f32 %v649_v57, %v523_v30 }
 0x12f   :  { %v679_v63 = vmax.f32 %v654_v33, 0.0 }
 0x130   :  { %v586_v0 = vpop.permute.xlu1 %585  ;;  %v699_v13 = vmax.f32 %v674_v45, 0.0 }
 0x131   :  { %v643_v47 = vmul.f32 %v1526_v20, %v586_v0 }
 0x132   :  { %v534_v8 = vpop.permute.xlu0 %533  ;;  %v558_v26 = vpop.permute.xlu2 %557 }
 0x133   :  { %v668_v32 = vadd.f32 %v643_v47, %v517_v9  ;;  %v630_v40 = vmul.f32 %v1526_v20, %v534_v8  ;;  %v636_v18 = vmul.f32 %v1526_v20, %v558_v26 }
 0x135   :  { %v693_v34 = vmax.f32 %v668_v32, 0.0  ;;  %v655_v38 = vadd.f32 %v630_v40, %v504_v16  ;;  %v661_v31 = vadd.f32 %v636_v18, %v1477_v23  ;;  %v501_v40 = vmul.f32 %v1418_v39, %v1543_v53 }
 0x137   :  { %v680_v6 = vmax.f32 %v655_v38, 0.0  ;;  %v711_v25 = vpack.c.bf16 %v694_v60, %v693_v34  ;;  %v686_v10 = vmax.f32 %v661_v31, 0.0  ;;  %v526_v26 = vadd.f32 %v501_v40, %v1474_v22 }
 0x139   :  { %v463_v27 = vpop.permute.xlu1 %462  ;;  %v704_v61 = vpack.c.bf16 %v680_v6, %v679_v63 }
 0x13a   :  { %828 = vmatmul.bf16.gmra.mxu2 %v711_v25  ;;  %v499_v44 = vmul.f32 %v1418_v39, %v463_v27  ;;  %v594_v54 = vpop.permute.xlu0 %593 }
 0x13b   :  { %793 = vmatmul.bf16.vlgmr.msra.gmra.mxu0 %v704_v61  ;;  %v645_v9 = vmul.f32 %v1526_v20, %v594_v54 }
 0x13c   :  { %v447_v43 = vpop.permute.xlu2 %446  ;;  %v524_v37 = vadd.f32 %v499_v44, %v1382_v46 }
 0x13d   :  { %v495_v47 = vmul.f32 %v1418_v39, %v447_v43 }
 0x13f   :  { %v520_v8 = vadd.f32 %v495_v47, %v1425_v36 }
 0x143   :  { %v614_v56 = vpop.permute.xlu1 %613 }
 0x144   :  { %v650_v1 = vmul.f32 %v1526_v20, %v614_v56  ;;  %v467_v14 = vpop.permute.xlu2 %466 }
 0x145   :  { %v500_v34 = vmul.f32 %v1418_v39, %v467_v14 }
 0x146   :  { %v675_v4 = vadd.f32 %v650_v1, %v524_v37  ;;  %v562_v37 = vpop.permute.xlu0 %561 }
 0x147   :  { %v525_v36 = vadd.f32 %v500_v34, %v1453_v15  ;;  %v637_v1 = vmul.f32 %v1526_v20, %v562_v37 }
 0x148   :  { %v700_v48 = vmax.f32 %v675_v4, 0.0 }
 0x14a   :  { %v714_v3 = vpack.c.bf16 %v700_v48, %v699_v13 }
 0x14b   :  { %v554_v17 = vpop.permute.xlu1 %553 }
 0x14c   :  { %v635_v5 = vmul.f32 %v1526_v20, %v554_v17  ;;  %843 = vmatmul.bf16.vlgmr.msra.gmra.mxu3 %v714_v3  ;;  %v662_v3 = vadd.f32 %v637_v1, %v1520_v35 }
 0x14d   :  { %v622_v41 = vpop.permute.xlu2 %621 }
 0x14e   :  { %v660_v46 = vadd.f32 %v635_v5, %v509_v19  ;;  %v652_v38 = vmul.f32 %v1526_v20, %v622_v41  ;;  %v687_v17 = vmax.f32 %v662_v3, 0.0  ;;  %v606_v35 = vpop.permute.xlu0 %605 }
 0x150   :  { %v685_v11 = vmax.f32 %v660_v46, 0.0  ;;  %v677_v27 = vadd.f32 %v652_v38, %v526_v26 }
 0x152   :  { %v707_v28 = vpack.c.bf16 %v686_v10, %v685_v11  ;;  %v702_v53 = vmax.f32 %v677_v27, 0.0 }
 0x154   :  { %v443_v0 = vpop.permute.xlu1 %442  ;;  %808 = vmatmul.bf16.vlgmr.msra.gmra.mxu1 %v707_v28 }
 0x155   :  { %v494_v51 = vmul.f32 %v1418_v39, %v443_v0  ;;  %v542_v32 = vpop.permute.xlu2 %541  ;;  %v648_v0 = vmul.f32 %v1526_v20, %v606_v35 }
 0x156   :  { %v632_v57 = vmul.f32 %v1526_v20, %v542_v32 }
 0x157   :  { %v519_v58 = vadd.f32 %v494_v51, %v1409_v55 }
 0x158   :  { %v657_v45 = vadd.f32 %v632_v57, %v1506_v12 }
 0x159   :  { %v670_v33 = vadd.f32 %v645_v9, %v519_v58 }
 0x15a   :  { %v682_v4 = vmax.f32 %v657_v45, 0.0 }
 0x15b   :  { %v695_v6 = vmax.f32 %v670_v33, 0.0 }
 0x15d   :  { %v598_v23 = vpop.permute.xlu1 %597 }
 0x15e   :  { %v646_v16 = vmul.f32 %v1526_v20, %v598_v23  ;;  %v451_v30 = vpop.permute.xlu2 %450 }
 0x15f   :  { %v496_v31 = vmul.f32 %v1418_v39, %v451_v30 }
 0x160   :  { %v671_v60 = vadd.f32 %v646_v16, %v520_v8 }
 0x161   :  { %v521_v11 = vadd.f32 %v496_v31, %v1361_v42 }
 0x162   :  { %v696_v63 = vmax.f32 %v671_v60, 0.0  ;;  %v423_v60 = vpop.permute.xlu0 %422 }
 0x163   :  { %v489_v26 = vmul.f32 %v1418_v39, %v423_v60 }
 0x164   :  { %v712_v55 = vpack.c.bf16 %v696_v63, %v695_v6 }
 0x165   :  { %v618_v25 = vpop.permute.xlu1 %617  ;;  %v514_v27 = vadd.f32 %v489_v26, %v1384_v49 }
 0x166   :  { %v651_v61 = vmul.f32 %v1526_v20, %v618_v25  ;;  %833 = vmatmul.bf16.gmra.mxu2 %v712_v55 }
 0x167   :  { %v602_v13 = vpop.permute.xlu2 %601 }
 0x168   :  { %v676_v62 = vadd.f32 %v651_v61, %v525_v36 }
 0x16a   :  { %v701_v44 = vmax.f32 %v676_v62, 0.0 }
 0x16c   :  { %v715_v43 = vpack.c.bf16 %v702_v53, %v701_v44 }
 0x16d   :  { %v538_v56 = vpop.permute.xlu1 %537 }
 0x16e   :  { %v631_v22 = vmul.f32 %v1526_v20, %v538_v56  ;;  %848 = vmatmul.bf16.gmra.mxu3 %v715_v43 }
 0x16f   :  { %v626_v46 = vpop.permute.xlu2 %625 }
 0x170   :  { %v656_v15 = vadd.f32 %v631_v22, %v1431_v29  ;;  %v647_v29 = vmul.f32 %v1526_v20, %v602_v13  ;;  %v653_v16 = vmul.f32 %v1526_v20, %v626_v46 }
 0x172   :  { %v681_v50 = vmax.f32 %v656_v15, 0.0  ;;  %v672_v41 = vadd.f32 %v647_v29, %v521_v11 }
 0x174   :  { %v705_v18 = vpack.c.bf16 %v682_v4, %v681_v50  ;;  %v697_v54 = vmax.f32 %v672_v41, 0.0 }
 0x175   :  { %v566_v48 = vpop.permute.xlu1 %565 }
 0x176   :  { %v638_v14 = vmul.f32 %v1526_v20, %v566_v48  ;;  %798 = vmatmul.bf16.gmra.mxu0 %v705_v18 }
 0x177   :  { %v550_v58 = vpop.permute.xlu2 %549 }
 0x178   :  { %v663_v12 = vadd.f32 %v638_v14, %v1529_v21  ;;  %v634_v32 = vmul.f32 %v1526_v20, %v550_v58 }
 0x17a   :  { %v688_v19 = vmax.f32 %v663_v12, 0.0  ;;  %v659_v38 = vadd.f32 %v634_v32, %v1511_v7 }
 0x17c   :  { %v708_v5 = vpack.c.bf16 %v688_v19, %v687_v17  ;;  %v684_v25 = vmax.f32 %v659_v38, 0.0 }
 0x17e   :  { %v455_v10 = vpop.permute.xlu1 %454  ;;  %813 = vmatmul.bf16.gmra.mxu1 %v708_v5 }
 0x17f   :  { %v497_v28 = vmul.f32 %v1418_v39, %v455_v10  ;;  %v574_v6 = vpop.permute.xlu2 %573 }
 0x181   :  { %v522_v21 = vadd.f32 %v497_v28, %v1428_v59 }
 0x183   :  { %v673_v51 = vadd.f32 %v648_v0, %v522_v21 }
 0x185   :  { %v698_v9 = vmax.f32 %v673_v51, 0.0 }
 0x186   :  { %v475_v47 = vpop.permute.xlu1 %474 }
 0x187   :  { %v502_v23 = vmul.f32 %v1418_v39, %v475_v47  ;;  %v713_v8 = vpack.c.bf16 %v698_v9, %v697_v54  ;;  %v1613_v39 = vld [vmem:[%s1744_s4] ss:$0 sm:$0xff] }
 0x189   :  { %v527_v42 = vadd.f32 %v502_v23, %v1403_v52  ;;  %838 = vmatmul.bf16.gmra.mxu2 %v713_v8  ;;  %v640_v52 = vmul.f32 %v1526_v20, %v574_v6 }
 0x18b   :  { %v678_v33 = vadd.f32 %v653_v16, %v527_v42  ;;  %v665_v30 = vadd.f32 %v640_v52, %v514_v27 }
 0x18d   :  { %v703_v40 = vmax.f32 %v678_v33, 0.0  ;;  %v690_v57 = vmax.f32 %v665_v30, 0.0 }
 0x18f   :  { %v546_v34 = vpop.permute.xlu1 %545  ;;  %v716_v59 = vpack.c.bf16 %v703_v40, %v703_v40 }
 0x190   :  { %v633_v63 = vmul.f32 %v1526_v20, %v546_v34 }
 0x191   :  { %853 = vmatmul.bf16.gmra.mxu3 %v716_v59 }
 0x192   :  { %v658_v55 = vadd.f32 %v633_v63, %v1456_v24 }
 0x194   :  { %v683_v36 = vmax.f32 %v658_v55, 0.0 }
 0x196   :  { %v706_v61 = vpack.c.bf16 %v684_v25, %v683_v36 }
 0x197   :  { %v570_v62 = vpop.permute.xlu1 %569 }
 0x198   :  { %v639_v53 = vmul.f32 %v1526_v20, %v570_v62  ;;  %803 = vmatmul.bf16.gmra.mxu0 %v706_v61 }
 0x19a   :  { %v664_v7 = vadd.f32 %v639_v53, %v1493_v2 }
 0x19c   :  { %v689_v44 = vmax.f32 %v664_v7, 0.0 }
 0x19e   :  { %v709_v43 = vpack.c.bf16 %v690_v57, %v689_v44 }
 0x1a0   :  { %818 = vmatmul.bf16.gmra.mxu1 %v709_v43 }
 0x1ad   :  { %v824_v24 = vpop.f32.mrf.mxu2 }
 0x1ae   :  { %v825_v49 = vadd.f32 %v1613_v39, %v824_v24 }
 0x1b0   :  { %871 = vst.msk [vmem:[%s1745_s5 + $0x60] sm:$0xff] %vm858_vm0, %v825_v49 }
 0x1b5   :  { %v826_v20 = vpop.f32.mrf.mxu2 }
 0x1b6   :  { %v827_v2 = vadd.f32 %v1613_v39, %v826_v20 }
 0x1b8   :  { %872 = vst.msk [vmem:[%s1745_s5 + $0x68] sm:$0xff] %vm858_vm0, %v827_v2  ;;  %v794_v56 = vpop.f32.mrf.mxu0 }
 0x1b9   :  { %v795_v45 = vadd.f32 %v1613_v39, %v794_v56 }
 0x1bb   :  { %859 = vst.msk [vmem:[%s1745_s5] sm:$0xff] %vm858_vm0, %v795_v45 }
 0x1bd   :  { %v829_v22 = vpop.f32.mrf.mxu2 }
 0x1be   :  { %v830_v37 = vadd.f32 %v1613_v39, %v829_v22 }
 0x1c0   :  { %873 = vst.msk [vmem:[%s1745_s5 + $0x70] sm:$0xff] %vm858_vm0, %v830_v37  ;;  %v796_v15 = vpop.f32.mrf.mxu0 }
 0x1c1   :  { %v797_v1 = vadd.f32 %v1613_v39, %v796_v15 }
 0x1c3   :  { %860 = vst.msk [vmem:[%s1745_s5 + $0x8] sm:$0xff] %vm858_vm0, %v797_v1 }
 0x1c5   :  { %v831_v4 = vpop.f32.mrf.mxu2 }
 0x1c6   :  { %v832_v50 = vadd.f32 %v1613_v39, %v831_v4 }
 0x1c8   :  { %874 = vst.msk [vmem:[%s1745_s5 + $0x78] sm:$0xff] %vm858_vm0, %v832_v50 }
 0x1cf   :  { %v844_v13 = vpop.f32.mrf.mxu3 }
 0x1d0   :  { %v845_v18 = vadd.f32 %v1613_v39, %v844_v13 }
 0x1d1   :  { %v809_v48 = vpop.f32.mrf.mxu1 }
 0x1d2   :  { %879 = vst.msk [vmem:[%s1745_s5 + $0xa0] sm:$0xff] %vm858_vm0, %v845_v18  ;;  %v810_v3 = vadd.f32 %v1613_v39, %v809_v48 }
 0x1d4   :  { %865 = vst.msk [vmem:[%s1745_s5 + $0x30] sm:$0xff] %vm858_vm0, %v810_v3 }
 0x1d7   :  { %v846_v14 = vpop.f32.mrf.mxu3 }
 0x1d8   :  { %v847_v12 = vadd.f32 %v1613_v39, %v846_v14 }
 0x1d9   :  { %v811_v17 = vpop.f32.mrf.mxu1 }
 0x1da   :  { %880 = vst.msk [vmem:[%s1745_s5 + $0xa8] sm:$0xff] %vm858_vm0, %v847_v12  ;;  %v812_v19 = vadd.f32 %v1613_v39, %v811_v17 }
 0x1dc   :  { %866 = vst.msk [vmem:[%s1745_s5 + $0x38] sm:$0xff] %vm858_vm0, %v812_v19 }
 0x1e9   :  { %v834_v31 = vpop.f32.mrf.mxu2 }
 0x1ea   :  { %v835_v5 = vadd.f32 %v1613_v39, %v834_v31 }
 0x1ec   :  { %875 = vst.msk [vmem:[%s1745_s5 + $0x80] sm:$0xff] %vm858_vm0, %v835_v5 }
 0x1f1   :  { %v836_v29 = vpop.f32.mrf.mxu2  ;;  %v849_v46 = vpop.f32.mrf.mxu3 }
 0x1f2   :  { %v837_v10 = vadd.f32 %v1613_v39, %v836_v29  ;;  %v850_v11 = vadd.f32 %v1613_v39, %v849_v46 }
 0x1f3   :  { %v799_v28 = vpop.f32.mrf.mxu0 }
 0x1f4   :  { %876 = vst.msk [vmem:[%s1745_s5 + $0x88] sm:$0xff] %vm858_vm0, %v837_v10  ;;  %v800_v35 = vadd.f32 %v1613_v39, %v799_v28 }
 0x1f5   :  { %881 = vst.msk [vmem:[%s1745_s5 + $0xb0] sm:$0xff] %vm858_vm0, %v850_v11 }
 0x1f6   :  { %861 = vst.msk [vmem:[%s1745_s5 + $0x10] sm:$0xff] %vm858_vm0, %v800_v35 }
 0x1f9   :  { %v851_v0 = vpop.f32.mrf.mxu3 }
 0x1fa   :  { %v852_v41 = vadd.f32 %v1613_v39, %v851_v0 }
 0x1fb   :  { %v801_v21 = vpop.f32.mrf.mxu0  ;;  %v814_v51 = vpop.f32.mrf.mxu1 }
 0x1fc   :  { %882 = vst.msk [vmem:[%s1745_s5 + $0xb8] sm:$0xff] %vm858_vm0, %v852_v41  ;;  %v802_v54 = vadd.f32 %v1613_v39, %v801_v21  ;;  %v815_v9 = vadd.f32 %v1613_v39, %v814_v51 }
 0x1fe   :  { %862 = vst.msk [vmem:[%s1745_s5 + $0x18] sm:$0xff] %vm858_vm0, %v802_v54 }
 0x1ff   :  { %867 = vst.msk [vmem:[%s1745_s5 + $0x40] sm:$0xff] %vm858_vm0, %v815_v9 }
 0x203   :  { %v816_v47 = vpop.f32.mrf.mxu1 }
 0x204   :  { %v817_v58 = vadd.f32 %v1613_v39, %v816_v47 }
 0x206   :  { %868 = vst.msk [vmem:[%s1745_s5 + $0x48] sm:$0xff] %vm858_vm0, %v817_v58 }
 0x20c   :  { %v839_v23 = vpop.f32.mrf.mxu2 }
 0x20d   :  { %v840_v8 = vadd.f32 %v1613_v39, %v839_v23 }
 0x20f   :  { %877 = vst.msk [vmem:[%s1745_s5 + $0x90] sm:$0xff] %vm858_vm0, %v840_v8 }
 0x214   :  { %v841_v16 = vpop.f32.mrf.mxu2  ;;  %v854_v42 = vpop.f32.mrf.mxu3 }
 0x215   :  { %v842_v33 = vadd.f32 %v1613_v39, %v841_v16  ;;  %v855_v32 = vadd.f32 %v1613_v39, %v854_v42  ;;  %v804_v40 = vpop.f32.mrf.mxu0 }
 0x216   :  { %v805_v60 = vadd.f32 %v1613_v39, %v804_v40 }
 0x217   :  { %878 = vst.msk [vmem:[%s1745_s5 + $0x98] sm:$0xff] %vm858_vm0, %v842_v33 }
 0x218   :  { %883 = vst.msk [vmem:[%s1745_s5 + $0xc0] sm:$0xff] %vm858_vm0, %v855_v32 }
 0x219   :  { %863 = vst.msk [vmem:[%s1745_s5 + $0x20] sm:$0xff] %vm858_vm0, %v805_v60 }
 0x21c   :  { %v856_v34 = vpop.f32.mrf.mxu3 }
 0x21d   :  { %v806_v59 = vpop.f32.mrf.mxu0  ;;  %v819_v38 = vpop.f32.mrf.mxu1 }
 0x21e   :  { %v807_v63 = vadd.f32 %v1613_v39, %v806_v59  ;;  %v820_v6 = vadd.f32 %v1613_v39, %v819_v38 }
 0x220   :  { %864 = vst.msk [vmem:[%s1745_s5 + $0x28] sm:$0xff] %vm858_vm0, %v807_v63 }
 0x221   :  { %869 = vst.msk [vmem:[%s1745_s5 + $0x50] sm:$0xff] %vm858_vm0, %v820_v6 }
 0x225   :  { %v821_v26 = vpop.f32.mrf.mxu1 }
 0x226   :  { %v822_v55 = vadd.f32 %v1613_v39, %v821_v26 }
 0x228   :  { %870 = vst.msk [vmem:[%s1745_s5 + $0x58] sm:$0xff] %vm858_vm0, %v822_v55 }

</bundles_post_ra>
